<compile_context>
chip_gen: v5e
topology: v5e:2x2
jax: 0.10.0
libtpu: 0.0.40
codegen_flags: <defaults>
</compile_context>

<pallas_src>
import functools
import math

import jax
import jax.numpy as jnp
from jax.experimental import pallas as pl
from jax.experimental.pallas import tpu as pltpu

LN_EPS = 1e-5


# --------------------------------------------------------------------------
# Helpers
# --------------------------------------------------------------------------
def _vmem_limit_bytes():
    """Generation-aware VMEM limit: ~3/4 of physical, capped at 100 MiB.

    v5e/v6e (128 MiB physical) -> 96 MiB; v7x (64 MiB per-TC) -> 48 MiB.
    Falls back to 48 MiB if the hardware query is unavailable.
    """
    cap = 64 * 1024 * 1024
    try:
        cap = int(pltpu.get_tpu_info().vmem_capacity_bytes)
    except Exception:
        pass
    return max(32 * 1024 * 1024, min(100 * 1024 * 1024, (cap * 3) // 4))


def _divisor_tile(total, pref, mult):
    """Largest divisor of `total` that is <= pref and a multiple of `mult`.

    Falls back to `total` (a full-extent block is always legal)."""
    total = int(total)
    pref = max(1, min(int(pref), total))
    for t in range(pref, 0, -1):
        if total % t == 0 and t % mult == 0:
            return t
    return total


# --------------------------------------------------------------------------
# Kernel 1: LayerNorm + fused projections (+ mask) + Q = b @ W4
# --------------------------------------------------------------------------
def _proj_kernel(s_ref, m_ref, g_ref, be_ref, w12_ref, b12_ref, w4_ref,
                 a_ref, q_ref, *, h):
    x = s_ref[0]                                         # [tl, c_s] f32
    # One-pass LayerNorm moments: E[x^2] - E[x]^2.
    mu = jnp.mean(x, axis=-1, keepdims=True)
    ex2 = jnp.mean(x * x, axis=-1, keepdims=True)
    var = jnp.maximum(ex2 - mu * mu, 0.0)
    xn = (x - mu) * jax.lax.rsqrt(var + LN_EPS)
    xn = xn * g_ref[...] + be_ref[...]                   # broadcast [1, c_s]

    # Fused projection, b first: ab[:, :H] = b, ab[:, H:] = a  (f32 accum).
    ab = jnp.dot(xn.astype(w12_ref.dtype), w12_ref[...],
                 preferred_element_type=jnp.float32) + b12_ref[...]
    ab = ab * m_ref[0]                                   # mask [tl, 1]

    b_half = ab[:, :h]                                   # offset-0 lane slice
    a_half = ab[:, h:]                                   # offset-H lane slice

    a_ref[0] = a_half.astype(a_ref.dtype)

    # Q[j, c*c_z + k] = sum_e b[j, e] * w_out[c*H + e, k]  (unpadded W4).
    q = jnp.dot(b_half.astype(w4_ref.dtype), w4_ref[...],
                preferred_element_type=jnp.float32)
    q_ref[0] = q.astype(q_ref.dtype)


# --------------------------------------------------------------------------
# Kernel 2: z_tile[ti, tj*c_z] = a_tile[ti, H] @ P_tile[H, tj*c_z] + bias
# --------------------------------------------------------------------------
def _opm_kernel(a_ref, p_ref, bias_ref, z_ref):
    z = jnp.dot(a_ref[0], p_ref[0], preferred_element_type=jnp.float32)
    z_ref[0] = (z + bias_ref[...]).astype(z_ref.dtype)   # bias [1, tj*c_z] f32


# --------------------------------------------------------------------------
# Wrapper
# --------------------------------------------------------------------------
def outer_product_mean_ss(s, mask, params, *, tl=256, ti=256, tj=64,
                          mxu_dtype=jnp.bfloat16, out_dtype=jnp.float32):
    """Pallas implementation of OuterProductMeanSS.forward.

    s:    [N, L, c_s] float32
    mask: [N, L]      float32 (or None)
    returns z: [N, L, L, c_z] (out_dtype, default float32)
    """
    N, L, c_s = s.shape
    w1 = params["w1"]; b1 = params["b1"]
    w2 = params["w2"]; b2 = params["b2"]
    gamma = params["ln_gamma"]; beta = params["ln_beta"]
    w_out = params["w_out"]; b_out = params["b_out"]
    H = w1.shape[1]
    c_z = w_out.shape[1]

    storage_dtype = jnp.dtype(mxu_dtype)
    sd = storage_dtype.itemsize
    out_dtype = jnp.dtype(out_dtype)
    osd = out_dtype.itemsize
    vmem_limit = _vmem_limit_bytes()

    # --- tile selection (respect (8,128) / lane-density constraints) ------
    tl = _divisor_tile(L, tl, 8)
    # v7x has 2 TensorCores: keep >= 4 stage-1 grid steps so both get work.
    while N * (L // tl) < 4 and tl > 8:
        new_tl = _divisor_tile(L, tl // 2, 8)
        if new_tl >= tl:
            break
        tl = new_tl

    ti = _divisor_tile(L, ti, 8)
    mult_j = 128 // math.gcd(int(c_z), 128)        # tj*c_z must be %128 == 0
    tj = _divisor_tile(L, tj, mult_j)

    def stage2_vmem(ti_, tj_):
        a_b = ti_ * H * sd
        p_b = H * tj_ * c_z * sd
        o_b = ti_ * tj_ * c_z * osd
        bias_b = tj_ * c_z * 4
        return 2 * (a_b + p_b + o_b + bias_b)      # double-buffered

    budget = (vmem_limit * 3) // 5                 # headroom for internals
    while stage2_vmem(ti, tj) > budget:
        if ti > 8:
            nt = _divisor_tile(L, max(8, ti // 2), 8)
            if nt < ti:
                ti = nt
                continue
        if tj > mult_j:
            nt = _divisor_tile(L, max(mult_j, tj // 2), mult_j)
            if nt < tj:
                tj = nt
                continue
        break

    # --- parameter prep ----------------------------------------------------
    if mask is None:
        mask = jnp.ones((N, L), dtype=jnp.float32)
    mask3 = mask.astype(jnp.float32).reshape(N, L, 1)

    gamma2 = gamma.reshape(1, c_s).astype(jnp.float32)
    beta2 = beta.reshape(1, c_s).astype(jnp.float32)

    # Fused projection with b first, so the Q matmul uses ab[:, :H] and W4
    # needs no zero padding; a comes from the offset-H lane slice.
    w12 = jnp.concatenate([w2, w1], axis=1).astype(storage_dtype)   # [c_s, 2H]
    b12 = jnp.concatenate([b2, b1], axis=0).reshape(1, 2 * H).astype(jnp.float32)

    # W4[e, c*c_z + k] = w_out[c*H + e, k]   (unpadded, [H, H*c_z]).
    w4 = (w_out.reshape(H, H, c_z).transpose(1, 0, 2)
               .reshape(H, H * c_z)).astype(storage_dtype)

    # ---- stage 1: layernorm + fused projections + Q ----------------------
    flops1 = N * L * (2 * c_s * 2 * H + 2 * H * H * c_z + 8 * c_s)
    bytes1 = (N * L * c_s * 4 + N * L * 4
              + N * L * H * sd + N * L * H * c_z * sd
              + (c_s * 2 * H + H * H * c_z) * sd)
    proj = pl.pallas_call(
        functools.partial(_proj_kernel, h=H),
        out_shape=(jax.ShapeDtypeStruct((N, L, H), storage_dtype),
                   jax.ShapeDtypeStruct((N, L, H * c_z), storage_dtype)),
        grid=(N, L // tl),
        in_specs=[
            pl.BlockSpec((1, tl, c_s), lambda n, i: (n, i, 0)),
            pl.BlockSpec((1, tl, 1), lambda n, i: (n, i, 0)),
            pl.BlockSpec((1, c_s), lambda n, i: (0, 0)),
            pl.BlockSpec((1, c_s), lambda n, i: (0, 0)),
            pl.BlockSpec((c_s, 2 * H), lambda n, i: (0, 0)),
            pl.BlockSpec((1, 2 * H), lambda n, i: (0, 0)),
            pl.BlockSpec((H, H * c_z), lambda n, i: (0, 0)),
        ],
        out_specs=(pl.BlockSpec((1, tl, H), lambda n, i: (n, i, 0)),
                   pl.BlockSpec((1, tl, H * c_z), lambda n, i: (n, i, 0))),
        compiler_params=pltpu.CompilerParams(
            dimension_semantics=("parallel", "parallel"),
            vmem_limit_bytes=vmem_limit),
        cost_estimate=pl.CostEstimate(
            flops=int(flops1), transcendentals=int(N * L),
            bytes_accessed=int(bytes1)),
    )
    a_arr, q_arr = proj(s, mask3, gamma2, beta2, w12, b12, w4)

    # Q[n, j, c*c_z+k] -> P[n, c, j*c_z+k].  Kept as a single XLA transpose
    # copy (bf16: ~2*N*L*H*c_z*sd bytes); an in-kernel emit in [N,H,L*c_z]
    # layout needs a lane-splitting reshape (c_z < 128) that Mosaic handles
    # poorly, and this copy is a few % of the stage-2 z writeback.
    p2 = (q_arr.reshape(N, L, H, c_z)
               .transpose(0, 2, 1, 3)
               .reshape(N, H, L * c_z))

    # Bias for one j-tile, fetched once (constant index_map): no [L*c_z] array.
    b_out_tile = jnp.tile(b_out.astype(jnp.float32), (tj,)).reshape(1, tj * c_z)

    # ---- stage 2: z = a @ P + bias  (lane-dense flat output) -------------
    flops2 = 2 * N * L * L * H * c_z + N * L * L * c_z
    bytes2 = (N * L * L * c_z * osd
              + N * (L // ti) * H * L * c_z * sd
              + N * (L // tj) * L * H * sd
              + tj * c_z * 4)
    opm = pl.pallas_call(
        _opm_kernel,
        out_shape=jax.ShapeDtypeStruct((N, L, L * c_z), out_dtype),
        grid=(N, L // ti, L // tj),
        in_specs=[
            pl.BlockSpec((1, ti, H), lambda n, i, j: (n, i, 0)),
            pl.BlockSpec((1, H, tj * c_z), lambda n, i, j: (n, 0, j)),
            pl.BlockSpec((1, tj * c_z), lambda n, i, j: (0, 0)),
        ],
        out_specs=pl.BlockSpec((1, ti, tj * c_z), lambda n, i, j: (n, i, j)),
        compiler_params=pltpu.CompilerParams(
            dimension_semantics=("parallel", "parallel", "parallel"),
            vmem_limit_bytes=vmem_limit),
        cost_estimate=pl.CostEstimate(
            flops=int(flops2), transcendentals=0, bytes_accessed=int(bytes2)),
    )
    z_flat = opm(a_arr, p2, b_out_tile)
    return z_flat.reshape(N, L, L, c_z)


# --------------------------------------------------------------------------
# Pure-JAX reference (mirrors the PyTorch forward; no mask normalization,
# exactly as in the module spec)
# --------------------------------------------------------------------------
def reference_forward(s, mask, params):
    hp = jax.lax.Precision.HIGHEST
    mu = s.mean(-1, keepdims=True)
    var = ((s - mu) ** 2).mean(-1, keepdims=True)
    sn = (s - mu) / jnp.sqrt(var + LN_EPS)
    sn = sn * params["ln_gamma"] + params["ln_beta"]
    a = jnp.dot(sn, params["w1"], precision=hp) + params["b1"]
    b = jnp.dot(sn, params["w2"], precision=hp) + params["b2"]
    if mask is not None:
        a = a * mask[..., None]
        b = b * mask[..., None]
    outer = jnp.einsum("nic,nje->nijce", a, b, precision=hp)
    N, L = s.shape[0], s.shape[1]
    outer = outer.reshape(N, L, L, -1)
    return jnp.dot(outer, params["w_out"], precision=hp) + params["b_out"]


# --------------------------------------------------------------------------
if __name__ == "__main__":
    # Small, TPU-friendly shapes; explicit small tiles so all grids are > 1.
    N, L, c_s, c_h, c_z = 2, 32, 64, 32, 16

    key = jax.random.PRNGKey(0)
    ks = jax.random.split(key, 8)

    # NOTE: the torch module uses init='final' (zeros) for linear_out; small
    # random values are used instead so the kernel output is non-trivial.
    params = {
        "ln_gamma": jnp.ones((c_s,), jnp.float32),
        "ln_beta": jnp.zeros((c_s,), jnp.float32),
        "w1": (jax.random.normal(ks[0], (c_s, c_h), jnp.float32) * 0.1),
        "b1": (jax.random.normal(ks[1], (c_h,), jnp.float32) * 0.1),
        "w2": (jax.random.normal(ks[2], (c_s, c_h), jnp.float32) * 0.1),
        "b2": (jax.random.normal(ks[3], (c_h,), jnp.float32) * 0.1),
        "w_out": (jax.random.normal(ks[4], (c_h * c_h, c_z), jnp.float32) * 0.05),
        "b_out": (jax.random.normal(ks[5], (c_z,), jnp.float32) * 0.05),
    }

    s = jax.random.normal(ks[6], (N, L, c_s), jnp.float32)
    mask = (jax.random.uniform(ks[7], (N, L)) > 0.2).astype(jnp.float32)

    z_ref = reference_forward(s, mask, params)

    # f32 MXU path.
    z32 = outer_product_mean_ss(s, mask, params, tl=16, ti=16, tj=16,
                                mxu_dtype=jnp.float32)
    z32 = jax.block_until_ready(z32)
    assert z32.shape == (N, L, L, c_z)
    assert jnp.allclose(z32, z_ref, atol=2e-2, rtol=2e-2), (
        "f32 max abs err = %f" % float(jnp.max(jnp.abs(z32 - z_ref))))

    # Default path: bf16 MXU operands / intermediates, f32 accumulation + z.
    zbf = outer_product_mean_ss(s, mask, params, tl=16, ti=16, tj=16)
    zbf = jax.block_until_ready(zbf)
    assert zbf.shape == (N, L, L, c_z)
    assert zbf.dtype == jnp.float32
    assert jnp.allclose(zbf, z_ref, atol=2e-1, rtol=2e-1), (
        "bf16 max abs err = %f" % float(jnp.max(jnp.abs(zbf - z_ref))))

    print("KERNEL_OK")
</pallas_src>

<mosaic_0001>
module attributes {stable_mosaic.version = 11 : i64} {
  func.func @_proj_kernel(%arg0: i32, %arg1: i32, %arg2: memref<1x16x64xf32, #tpu.memory_space<vmem>>, %arg3: memref<1x16x1xf32, #tpu.memory_space<vmem>>, %arg4: memref<1x64xf32, #tpu.memory_space<vmem>>, %arg5: memref<1x64xf32, #tpu.memory_space<vmem>>, %arg6: memref<64x64xf32, #tpu.memory_space<vmem>>, %arg7: memref<1x64xf32, #tpu.memory_space<vmem>>, %arg8: memref<32x512xf32, #tpu.memory_space<vmem>>, %arg9: memref<1x16x32xf32, #tpu.memory_space<vmem>>, %arg10: memref<1x16x512xf32, #tpu.memory_space<vmem>>) attributes {dimension_semantics = [#tpu.dimension_semantics<parallel>, #tpu.dimension_semantics<parallel>], iteration_bounds = array<i64: 2, 2>, scalar_prefetch = 0 : i64, scratch_operands = 0 : i64, tpu.core_type = #tpu.core_type<tc>, window_params = [{transform_indices = @transform_0, window_bounds = array<i64: 1, 16, 64>}, {transform_indices = @transform_1, window_bounds = array<i64: 1, 16, 1>}, {pipeline_mode = #tpu.pipeline_mode<synchronous>, transform_indices = @transform_2, window_bounds = array<i64: 1, 64>}, {pipeline_mode = #tpu.pipeline_mode<synchronous>, transform_indices = @transform_3, window_bounds = array<i64: 1, 64>}, {pipeline_mode = #tpu.pipeline_mode<synchronous>, transform_indices = @transform_4, window_bounds = array<i64: 64, 64>}, {pipeline_mode = #tpu.pipeline_mode<synchronous>, transform_indices = @transform_5, window_bounds = array<i64: 1, 64>}, {pipeline_mode = #tpu.pipeline_mode<synchronous>, transform_indices = @transform_6, window_bounds = array<i64: 32, 512>}, {transform_indices = @transform_7, window_bounds = array<i64: 1, 16, 32>}, {transform_indices = @transform_8, window_bounds = array<i64: 1, 16, 512>}]} {
    %c0 = arith.constant 0 : index
    %c0_0 = arith.constant 0 : index
    %c0_1 = arith.constant 0 : index
    %0 = vector.load %arg2[%c0, %c0_0, %c0_1] : memref<1x16x64xf32, #tpu.memory_space<vmem>>, vector<1x16x64xf32>
    %1 = vector.shape_cast %0 : vector<1x16x64xf32> to vector<16x64xf32>
    %cst = arith.constant dense<0.000000e+00> : vector<16xf32>
    %2 = vector.multi_reduction <add>, %1, %cst [1] : vector<16x64xf32> to vector<16xf32>
    %3 = vector.shape_cast %2 : vector<16xf32> to vector<16x1xf32>
    %cst_2 = arith.constant 6.400000e+01 : f32
    %4 = vector.broadcast %cst_2 : f32 to vector<16x1xf32>
    %5 = arith.divf %3, %4 : vector<16x1xf32>
    %6 = arith.mulf %1, %1 : vector<16x64xf32>
    %cst_3 = arith.constant dense<0.000000e+00> : vector<16xf32>
    %7 = vector.multi_reduction <add>, %6, %cst_3 [1] : vector<16x64xf32> to vector<16xf32>
    %8 = vector.shape_cast %7 : vector<16xf32> to vector<16x1xf32>
    %cst_4 = arith.constant 6.400000e+01 : f32
    %9 = vector.broadcast %cst_4 : f32 to vector<16x1xf32>
    %10 = arith.divf %8, %9 : vector<16x1xf32>
    %11 = arith.mulf %5, %5 : vector<16x1xf32>
    %12 = arith.subf %10, %11 : vector<16x1xf32>
    %cst_5 = arith.constant 0.000000e+00 : f32
    %13 = vector.broadcast %cst_5 : f32 to vector<16x1xf32>
    %14 = arith.maximumf %12, %13 : vector<16x1xf32>
    %15 = vector.broadcast %5 : vector<16x1xf32> to vector<16x64xf32>
    %16 = arith.subf %1, %15 : vector<16x64xf32>
    %cst_6 = arith.constant 9.99999974E-6 : f32
    %17 = vector.broadcast %cst_6 : f32 to vector<16x1xf32>
    %18 = arith.addf %14, %17 : vector<16x1xf32>
    %19 = math.rsqrt %18 : vector<16x1xf32>
    %20 = vector.broadcast %19 : vector<16x1xf32> to vector<16x64xf32>
    %21 = arith.mulf %16, %20 : vector<16x64xf32>
    %c0_7 = arith.constant 0 : index
    %c0_8 = arith.constant 0 : index
    %22 = vector.load %arg4[%c0_7, %c0_8] : memref<1x64xf32, #tpu.memory_space<vmem>>, vector<1x64xf32>
    %23 = vector.broadcast %22 : vector<1x64xf32> to vector<16x64xf32>
    %24 = arith.mulf %21, %23 : vector<16x64xf32>
    %c0_9 = arith.constant 0 : index
    %c0_10 = arith.constant 0 : index
    %25 = vector.load %arg5[%c0_9, %c0_10] : memref<1x64xf32, #tpu.memory_space<vmem>>, vector<1x64xf32>
    %26 = vector.broadcast %25 : vector<1x64xf32> to vector<16x64xf32>
    %27 = arith.addf %24, %26 : vector<16x64xf32>
    %c0_11 = arith.constant 0 : index
    %c0_12 = arith.constant 0 : index
    %28 = vector.load %arg6[%c0_11, %c0_12] : memref<64x64xf32, #tpu.memory_space<vmem>>, vector<64x64xf32>
    %cst_13 = arith.constant dense<0.000000e+00> : vector<16x64xf32>
    %29 = tpu.matmul %27, %28, %cst_13 {dimension_numbers = #tpu.dot_dimension_numbers<[1], [0], [0], [1], [0, 0, 1, 1], [], []>} : vector<16x64xf32>, vector<64x64xf32>, vector<16x64xf32> -> vector<16x64xf32>
    %c0_14 = arith.constant 0 : index
    %c0_15 = arith.constant 0 : index
    %30 = vector.load %arg7[%c0_14, %c0_15] : memref<1x64xf32, #tpu.memory_space<vmem>>, vector<1x64xf32>
    %31 = vector.broadcast %30 : vector<1x64xf32> to vector<16x64xf32>
    %32 = arith.addf %29, %31 : vector<16x64xf32>
    %c0_16 = arith.constant 0 : index
    %c0_17 = arith.constant 0 : index
    %c0_18 = arith.constant 0 : index
    %33 = vector.load %arg3[%c0_16, %c0_17, %c0_18] : memref<1x16x1xf32, #tpu.memory_space<vmem>>, vector<1x16x1xf32>
    %34 = vector.shape_cast %33 : vector<1x16x1xf32> to vector<16x1xf32>
    %35 = vector.broadcast %34 : vector<16x1xf32> to vector<16x64xf32>
    %36 = arith.mulf %32, %35 : vector<16x64xf32>
    %37 = vector.extract_strided_slice %36 {offsets = [0, 0], sizes = [16, 32], strides = [1, 1]} : vector<16x64xf32> to vector<16x32xf32>
    %38 = vector.extract_strided_slice %36 {offsets = [0, 32], sizes = [16, 32], strides = [1, 1]} : vector<16x64xf32> to vector<16x32xf32>
    %c0_19 = arith.constant 0 : index
    %c0_20 = arith.constant 0 : index
    %c0_21 = arith.constant 0 : index
    %39 = vector.load %arg9[%c0_19, %c0_20, %c0_21] : memref<1x16x32xf32, #tpu.memory_space<vmem>>, vector<1x16x32xf32>
    %40 = vector.shape_cast %39 : vector<1x16x32xf32> to vector<16x32xf32>
    %41 = vector.shape_cast %38 : vector<16x32xf32> to vector<1x16x32xf32>
    tpu.vector_store %arg9[%c0_19, %c0_20, %c0_21], %41 {strides = array<i32>} : memref<1x16x32xf32, #tpu.memory_space<vmem>>, vector<1x16x32xf32>,
    %c0_22 = arith.constant 0 : index
    %c0_23 = arith.constant 0 : index
    %42 = vector.load %arg8[%c0_22, %c0_23] : memref<32x512xf32, #tpu.memory_space<vmem>>, vector<32x512xf32>
    %cst_24 = arith.constant dense<0.000000e+00> : vector<16x512xf32>
    %43 = tpu.matmul %37, %42, %cst_24 {dimension_numbers = #tpu.dot_dimension_numbers<[1], [0], [0], [1], [0, 0, 1, 1], [], []>} : vector<16x32xf32>, vector<32x512xf32>, vector<16x512xf32> -> vector<16x512xf32>
    %c0_25 = arith.constant 0 : index
    %c0_26 = arith.constant 0 : index
    %c0_27 = arith.constant 0 : index
    %44 = vector.load %arg10[%c0_25, %c0_26, %c0_27] : memref<1x16x512xf32, #tpu.memory_space<vmem>>, vector<1x16x512xf32>
    %45 = vector.shape_cast %44 : vector<1x16x512xf32> to vector<16x512xf32>
    %46 = vector.shape_cast %43 : vector<16x512xf32> to vector<1x16x512xf32>
    tpu.vector_store %arg10[%c0_25, %c0_26, %c0_27], %46 {strides = array<i32>} : memref<1x16x512xf32, #tpu.memory_space<vmem>>, vector<1x16x512xf32>,
    return
  }
  func.func @transform_0(%arg0: i32, %arg1: i32) -> (i32, i32, i32) {
    %c0_i32 = arith.constant 0 : i32
    %c0_i32_0 = arith.constant 0 : i32
    return %arg0, %arg1, %c0_i32 : i32, i32, i32
  }
  func.func @transform_1(%arg0: i32, %arg1: i32) -> (i32, i32, i32) {
    %c0_i32 = arith.constant 0 : i32
    %c0_i32_0 = arith.constant 0 : i32
    return %arg0, %arg1, %c0_i32 : i32, i32, i32
  }
  func.func @transform_2(%arg0: i32, %arg1: i32) -> (i32, i32) {
    %c0_i32 = arith.constant 0 : i32
    %c0_i32_0 = arith.constant 0 : i32
    %c0_i32_1 = arith.constant 0 : i32
    return %c0_i32, %c0_i32_0 : i32, i32
  }
  func.func @transform_3(%arg0: i32, %arg1: i32) -> (i32, i32) {
    %c0_i32 = arith.constant 0 : i32
    %c0_i32_0 = arith.constant 0 : i32
    %c0_i32_1 = arith.constant 0 : i32
    return %c0_i32, %c0_i32_0 : i32, i32
  }
  func.func @transform_4(%arg0: i32, %arg1: i32) -> (i32, i32) {
    %c0_i32 = arith.constant 0 : i32
    %c0_i32_0 = arith.constant 0 : i32
    %c0_i32_1 = arith.constant 0 : i32
    return %c0_i32, %c0_i32_0 : i32, i32
  }
  func.func @transform_5(%arg0: i32, %arg1: i32) -> (i32, i32) {
    %c0_i32 = arith.constant 0 : i32
    %c0_i32_0 = arith.constant 0 : i32
    %c0_i32_1 = arith.constant 0 : i32
    return %c0_i32, %c0_i32_0 : i32, i32
  }
  func.func @transform_6(%arg0: i32, %arg1: i32) -> (i32, i32) {
    %c0_i32 = arith.constant 0 : i32
    %c0_i32_0 = arith.constant 0 : i32
    %c0_i32_1 = arith.constant 0 : i32
    return %c0_i32, %c0_i32_0 : i32, i32
  }
  func.func @transform_7(%arg0: i32, %arg1: i32) -> (i32, i32, i32) {
    %c0_i32 = arith.constant 0 : i32
    %c0_i32_0 = arith.constant 0 : i32
    return %arg0, %arg1, %c0_i32 : i32, i32, i32
  }
  func.func @transform_8(%arg0: i32, %arg1: i32) -> (i32, i32, i32) {
    %c0_i32 = arith.constant 0 : i32
    %c0_i32_0 = arith.constant 0 : i32
    return %arg0, %arg1, %c0_i32 : i32, i32, i32
  }
}

</mosaic_0001>

<bundles_post_ra>
// kernel: tpu_custom_call.1
= control target key start
LH: loop header
LB: loop body
LE: loop exit
PB: predicated region body
PF: predicated region fallthrough
CT: control target
= control target key end

     0   :  { %14 = vsyncpa [#allocation3], 0  ;;  %s1515_s0 = inlined_call_operand.vmem [shape: f32[2,32,64], index: 0, kind: input, shape index: {}]   ;;  %s1516_s1 = inlined_call_operand.vmem [shape: f32[2,32,1], index: 1, kind: input, shape index: {}]   ;;  %s1517_s2 = inlined_call_operand.vmem [shape: f32[1,64], index: 2, kind: input, shape index: {}]   ;;  %s1518_s3 = inlined_call_operand.vmem [shape: f32[1,64], index: 3, kind: input, shape index: {}]   ;;  %s1519_s4 = inlined_call_operand.hbm [shape: f32[64,64], index: 4, kind: input, shape index: {}]   ;;  %s1520_s5 = inlined_call_operand.vmem [shape: f32[1,64], index: 5, kind: input, shape index: {}]   ;;  %s1521_s6 = inlined_call_operand.hbm [shape: f32[32,512], index: 6, kind: input, shape index: {}]   ;;  %s1522_s7 = inlined_call_operand.hbm [shape: f32[2,32,32], index: 7, kind: output, shape index: {0}]   ;;  %s1523_s8 = inlined_call_operand.hbm [shape: f32[2,32,512], index: 8, kind: output, shape index: {1}]  }
   0x1   :  { %15 = vsyncpa [#allocation6], 0 }
   0x2   :  { %16 = vsyncpa [#allocation4], 0 }
   0x3   :  { %18 = vsyncpa [#allocation4 + $0x1], 0 }
   0x4   :  { %19 = vsyncpa [#allocation9], 0 }
   0x5   :  { %21 = vsyncpa [#allocation9 + $0x1], 0  ;;  %s1294_s27 = smov 0   ;;  %s1296_s28 = smov 0  }
   0x6   :  { %s1298_s29 = smov 0   ;;  %s1300_s30 = smov 0  }
   0x7   :  { %s1302_s9 = smov 0   ;;  %s1304_s10 = smov 0  }
   0x8   :  { %s1306_s11 = smov 0   ;;  %s1308_s12 = smov 0  }
   0x9 LB: > { %1530 = sst [smem:[#allocation14_spill]] %s1206_s27  ;;  %s878_s13 = sadd.s32 4294967295, %s1234_s12   ;;  %s1234_s12 = sphi %s1308_s12, %s27_s12   ;;  %s1230_s11 = sphi %s1306_s11, %s1545_s11   ;;  %s1226_s10 = sphi %s1304_s10, %s1544_s10   ;;  %s1222_s9 = sphi %s1302_s9, %s1543_s9   ;;  %s1218_s30 = sphi %s1300_s30, %s1542_s30   ;;  %s1214_s29 = sphi %s1298_s29, %s1548_s29   ;;  %s1210_s28 = sphi %s1296_s28, %s1547_s28   ;;  %s1206_s27 = sphi %s1294_s27, %s1546_s27  }
   0xa   : > { %1531 = sst [smem:[#allocation15_spill]] %s1226_s10  ;;  %s879_s14 = sadd.s32 4294967294, %s1234_s12  }
   0xb   : > { %1532 = sst [smem:[#allocation16_spill]] %s1230_s11  ;;  %s36_s15 = sadd.s32 1, %s1226_s10 }
   0xc   : > { %s39_s16 = sadd.s32 1, %s1230_s11  ;;  %p37_p0 = scmp.ge.s32.totalorder %s36_s15, 2 }
   0xd   : > { %s209_s17 = sadd.s32 1, %s1214_s29  ;;  %p219_p1 = scmp.ne.s32.totalorder %s1214_s29, %s1210_s28 }
   0xe   : > { %p220_p2 = scmp.eq.s32.totalorder %s878_s13, 3  ;;  %s1550_s15 = smov (%p37_p0, %s36_s15), 0 }
   0xf   : > { %1533 = sst [smem:[#allocation17_spill]] %s1550_s15  ;;  %s1552_s16 = smov (!%p37_p0, %s39_s16), %s1230_s11 }
  0x10   : > { %s205_s18 = ssub.s32 %s1226_s10, %s1550_s15  ;;  %p1346_p3 = por %p220_p2, %p219_p1 }
  0x11   : > { %p41_p4 = scmp.ge.s32.totalorder %s1552_s16, 2  ;;  %p225_p5 = scmp.ne.s32.totalorder %s1210_s28, %s1206_s27 }
  0x12   : > { %p226_p6 = scmp.eq.s32.totalorder %s879_s14, 3  ;;  %p880_p7 = scmp.ge.s32.totalorder %s1234_s12, 1 }
  0x13   : > { %s1554_s16 = smov (%p41_p4, %s1552_s16), 0  ;;  %p261_p9 = scmp.lt.s32.totalorder %s1234_s12, 5 }
  0x14   : > { %1535 = sst [smem:[#allocation18_spill]] %s1554_s16  ;;  %p1355_p8 = por %p226_p6, %p225_p5 }
  0x15   : > { %s204_s21 = ssub.s32 %s1230_s11, %s1554_s16  ;;  %p1362_p10 = pnand %p880_p7, %p261_p9 }
  0x16   : > { %s1536_s20 = scalar_select %p1355_p8, 1, 0 }
  0x17   : > { %s206_s22 = sor.u32 %s205_s18, %s204_s21  ;;  %p1366_p12 = scmp.eq.s32.totalorder %s878_s13, 0 }
  0x18   : > { %1537 = sst [smem:[#allocation19_spill]] %s1536_s20  ;;  %p207_p11 = scmp.eq.s32.totalorder %s206_s22, 0 }
  0x19   : > { %p933_p13 = pneg %p1362_p10  ;;  %s278_s14 = sshll.u32 %s1519_s4, 4  ;;  %s279_s14 = int_to_ptr.hbm [resolvable:$true] %s278_s14 }
  0x1a   : > { %s1376_s15 = scalar_select %p207_p11, %s1214_s29, %s209_s17  }
  0x1b   : > { %s1236_s18 = smov [#allocation2]   ;;  %p934_p0 = pnand %p1366_p12, %p933_p13 }
  0x1c   : > { %s280_s21 = sshll.u32 %s1236_s18, 4  ;;  %s1237_s22 = smov 128   ;;  %s281_s21 = int_to_ptr.vmem [resolvable:$true] %s280_s21 }
  0x1d   : > { %s1238_s13 = smov 8   ;;  %s295_s10 = sshll.u32 %s1521_s6, 4  ;;  %s296_s10 = int_to_ptr.hbm [resolvable:$true] %s295_s10 }
  0x1e   : > { %936 = dma.hbm_to_vmem [thread:$0]  (!%p934_p0), %s279_s14, 1024, %s281_s21, [#allocation3], %s1237_s22, %s1237_s22, %s1238_s13  }
  0x1f   : > { %s1239_s20 = smov [#allocation5]   ;;  %s1240_s25 = smov 512  }
  0x20   : > { %s297_s27 = sshll.u32 %s1239_s20, 4  ;;  %s1241_s17 = smov 32   ;;  %s298_s27 = int_to_ptr.vmem [resolvable:$true] %s297_s27 }
  0x21   : > { %939 = dma.hbm_to_vmem [thread:$0]  (!%p934_p0), %s296_s10, 2048, %s298_s27, [#allocation6], %s1240_s25, %s1240_s25, %s1241_s17  }
  0x22   : > { %339 = sbr.rel (%p1362_p10) target bundleno = 499 (0x1f3), region = 48 }
  0x27   : > { %1189 = dma.done.wait (%p1366_p12), [#allocation3], 1024  }
  0x28   : > { %1191 = vsyncadd (%p1366_p12), [#allocation3], 4294966272 }
  0x29   : > { %1193 = dma.done.wait (%p1366_p12), [#allocation6], 2048  }
  0x2a   : > { %1195 = vsyncadd (%p1366_p12), [#allocation6], 4294965248  ;;  %s1394_s11 = sshll.u32 %s1218_s30, 1  ;;  %p398_p1 = scmp.lt.s32.totalorder %s1222_s9, 1  ;;  %vm421_vm0 = vcmask 523264   ;;  %v1242_v8 = vmov 64.0  }
  0x2b   : > { %p400_p2 = scmp.lt.s32.totalorder %s1394_s11, 3  ;;  %1034 = vrcp.f32 %v1242_v8  ;;  %v498_v13 = vld [vmem:[#allocation2 + $0x38] sm:$0xff]  ;;  %v497_v14 = vld [vmem:[#allocation2 + $0x30] sm:$0xff]  ;;  %v496_v16 = vld [vmem:[#allocation2 + $0x28] sm:$0xff]  ;;  %v1243_v40 = vmov 0   ;;  %vm554_vm8 = vcmask 261120  }
  0x2c   : > { %s399_s27 = scalar_select %p398_p1, %s1222_s9, 1  ;;  %517 = vmatpush.msra.mxu0 %v498_v13  ;;  %v495_v19 = vld [vmem:[#allocation2 + $0x20] sm:$0xff]  ;;  %v494_v20 = vld [vmem:[#allocation2 + $0x18] sm:$0xff]  ;;  %v493_v22 = vld [vmem:[#allocation2 + $0x10] sm:$0xff]  ;;  %1029 = vset.pattern.permute.xlu2 %v1243_v40 }
  0x2d   : > { %s401_s10 = scalar_select %p400_p2, %s1394_s11, 3  ;;  %v492_v24 = vld [vmem:[#allocation2 + $0x8] sm:$0xff]  ;;  %v491_v26 = vld [vmem:[#allocation2] sm:$0xff]  ;;  %1030 = vset.pattern.permute.xlu0 %v1243_v40  ;;  %v560_v13 = vld [vmem:[#allocation5 + $0x18] sm:$0xff] }
  0x2e   : > { %s890_s16 = sshll.u32 %s399_s27, 2  ;;  %518 = vmatpush.msra.mxu0 %v497_v14  ;;  %v1031_v55 = vld [vmem:[%s1517_s2] ss:$0 sm:$0xff]  ;;  %v570_v14 = vld [vmem:[#allocation5 + $0x68] sm:$0xff]  ;;  %s1450_s24 = sand.u32 1, %s1210_s28  }
  0x2f   : > { %s1400_s20 = sadd.s32 %s890_s16, %s401_s10  ;;  %v1032_v58 = vld [vmem:[%s1518_s3] ss:$0 sm:$0xff]  ;;  %s888_s10 = sshll.u32 %s1450_s24, 6 }
  0x30   : > { %s891_s23 = sshll.u32 %s1400_s20, 3  ;;  %519 = vmatpush.msra.mxu0 %v496_v16  ;;  %v557_v8 = vld [vmem:[#allocation5] sm:$0xff]  ;;  %v562_v16 = vld [vmem:[#allocation5 + $0x28] sm:$0xff]  ;;  %s1244_s20 = smov 96  }
  0x31   : > { %s405_s14 = scalar_lea.vmem %s1515_s0, %s891_s23  ;;  %v1035_v9 = vpop.eup %1034  ;;  %s415_s22 = scalar_lea.vmem %s1516_s1, %s891_s23 }
  0x32   : > { %v1408_v0 = vld [vmem:[%s405_s14 + $0x8] sm:$0xff]  ;;  %v1410_v1 = vld [vmem:[%s405_s14] sm:$0xff]  ;;  %v429_v10 = vmul.f32 64.0, %v1035_v9  ;;  %vm433_vm1 = vweird.f32 %v1035_v9  ;;  %520 = vmatpush.msra.mxu0 %v495_v19  ;;  %s908_s23 = sshll.u32 %s1222_s9, 2  ;;  %s887_s14 = sshll.u32 %s1450_s24, 4 }
  0x33   : > { %v425_v2 = vsel %vm421_vm0, %v1408_v0, 0.0  ;;  %v422_v3 = vsel %vm421_vm0, %v1410_v1, 0.0  ;;  %v438_v4 = vmul.f32 %v1408_v0, %v1408_v0  ;;  %v437_v5 = vmul.f32 %v1410_v1, %v1410_v1  ;;  %v533_v39 = vld [vmem:[%s415_s22 + $0x8] sm:$0xff]  ;;  %v532_v45 = vld [vmem:[%s415_s22] sm:$0xff]  ;;  %s694_s26 = sadd.s32 %s908_s23, %s1394_s11  ;;  %s389_s25 = scalar_lea.vmem [#allocation7], %s887_s14 }
  0x34   : > { %426 = vadd.xlane.f32.xlu1 %v425_v2  ;;  %423 = vadd.xlane.f32.xlu0 %v422_v3  ;;  %v430_v11 = vsub.f32 1.0, %v429_v10  ;;  %v569_v3 = vld [vmem:[#allocation5 + $0x60] sm:$0xff]  ;;  %v572_v10 = vld [vmem:[#allocation5 + $0x78] sm:$0xff]  ;;  %s909_s18 = sshll.u32 %s694_s26, 3  ;;  %s697_s27 = sshll.u32 %s389_s25, 4  ;;  %s698_s27 = int_to_ptr.vmem [resolvable:$true] %s697_s27 }
  0x35   : > { %v442_v6 = vsel %vm421_vm0, %v438_v4, 0.0  ;;  %v439_v7 = vsel %vm421_vm0, %v437_v5, 0.0  ;;  %521 = vmatpush.msra.mxu0 %v494_v20  ;;  %541 = vperm.xlu2 %1029, %v533_v39   ;;  %v571_v4 = vld [vmem:[#allocation5 + $0x70] sm:$0xff]  ;;  %v565_v5 = vld [vmem:[#allocation5 + $0x40] sm:$0xff]  ;;  %s696_s13 = scalar_lea.hbm %s1522_s7, %s909_s18  ;;  %s678_s11 = scalar_lea.sflag [#allocation4], %s1450_s24 }
  0x36   : > { %v431_v12 = vmul.f32 %v1035_v9, %v430_v11  ;;  %589 = vmatpush.msra.mxu1 %v569_v3  ;;  %635 = vmatpush.msra.mxu3 %v571_v4  ;;  %v568_v11 = vld [vmem:[#allocation5 + $0x58] sm:$0xff]  ;;  %v1033_v19 = vld [vmem:[%s1520_s5] ss:$0 sm:$0xff]  ;;  %s699_s17 = sshll.u32 %s696_s13, 4  ;;  %s1120_s14 = scalar_lea.hbm %s1522_s7, 64  ;;  %s700_s17 = int_to_ptr.hbm [resolvable:$true] %s699_s17 }
  0x37   : > { %522 = vmatpush.msra.mxu0 %v493_v22  ;;  %917 = vmatpush.msra.mxu2 %v569_v3  ;;  %s1114_s16 = sshra.s32 %s700_s17, 4  ;;  %s1115_s16 = int_to_ptr.hbm [resolvable:$true] %s1114_s16 }
  0x38   : > { %v432_v15 = vadd.f32 %v1035_v9, %v431_v12  ;;  %590 = vmatpush.msra.mxu1 %v565_v5  ;;  %v564_v12 = vld [vmem:[#allocation5 + $0x38] sm:$0xff]  ;;  %p1121_p7 = scmp.lt.s32.totalorder %s1115_s16, %s1522_s7 }
  0x39   : > { %523 = vmatpush.msra.mxu0 %v492_v24  ;;  %918 = vmatpush.msra.mxu2 %v565_v5 }
  0x3a   : > { %v434_v21 = vsel %vm433_vm1, %v1035_v9, %v432_v15  ;;  %v559_v9 = vld [vmem:[#allocation5 + $0x10] sm:$0xff]  ;;  %v566_v15 = vld [vmem:[#allocation5 + $0x48] sm:$0xff] }
  0x3b   : > { %524 = vmatpush.msra.mxu0 %v491_v26 }
  0x3c   : > { %443 = vadd.xlane.f32.xlu1 %v442_v6  ;;  %440 = vadd.xlane.f32.xlu0 %v439_v7  ;;  %v567_v6 = vld [vmem:[#allocation5 + $0x50] sm:$0xff]  ;;  %v561_v7 = vld [vmem:[#allocation5 + $0x20] sm:$0xff] }
  0x3d   : > { %536 = vperm.xlu2 %1029, %v532_v45   ;;  %636 = vmatpush.msra.mxu3 %v567_v6 }
  0x3e   : > { %591 = vmatpush.msra.mxu1 %v561_v7  ;;  %919 = vmatpush.msra.mxu2 %v561_v7 }
  0x40   : > { %592 = vmatpush.msra.mxu1 %v557_v8  ;;  %920 = vmatpush.msra.mxu2 %v557_v8 }
  0x42   : > { %658 = vmatpush.msrb.mxu1 %v572_v10  ;;  %612 = vmatpush.msrb.mxu2 %v570_v14 }
  0x44   : > { %659 = vmatpush.msrb.mxu1 %v568_v11  ;;  %613 = vmatpush.msrb.mxu2 %v566_v15 }
  0x46   : > { %660 = vmatpush.msrb.mxu1 %v564_v12  ;;  %614 = vmatpush.msrb.mxu2 %v562_v16 }
  0x48   : > { %661 = vmatpush.msrb.mxu1 %v560_v13 }
  0xa7   : > { %v427_v17 = vpop.xlane.xlu1 %426  ;;  %v424_v18 = vpop.xlane.xlu0 %423 }
  0xa8   : > { %v436_v23 = vmul.f32 %v434_v21, %v427_v17  ;;  %v435_v25 = vmul.f32 %v434_v21, %v424_v18  ;;  %v558_v17 = vld [vmem:[#allocation5 + $0x8] sm:$0xff]  ;;  %v542_v18 = vpop.permute.xlu2 %541 }
  0xa9   : > { %615 = vmatpush.msrb.mxu2 %v558_v17 }
  0xaa   : > { %v448_v27 = vmul.f32 %v436_v23, %v436_v23  ;;  %v447_v30 = vmul.f32 %v435_v25, %v435_v25  ;;  %v453_v54 = vsub.f32 %v1410_v1, %v435_v25  ;;  %v454_v60 = vsub.f32 %v1408_v0, %v436_v23  ;;  %v563_v0 = vld [vmem:[#allocation5 + $0x30] sm:$0xff] }
  0xab   : > { %637 = vmatpush.msra.mxu3 %v563_v0 }
  0xad   : > { %638 = vmatpush.msra.mxu3 %v559_v9 }
  0xaf   : > { %v444_v28 = vpop.xlane.xlu1 %443  ;;  %v441_v29 = vpop.xlane.xlu0 %440 }
  0xb0   : > { %v446_v31 = vmul.f32 %v444_v28, %v434_v21  ;;  %v445_v32 = vmul.f32 %v441_v29, %v434_v21  ;;  %v537_v21 = vpop.permute.xlu2 %536 }
  0xb2   : > { %v450_v33 = vsub.f32 %v446_v31, %v448_v27  ;;  %v449_v34 = vsub.f32 %v445_v32, %v447_v30 }
  0xb4   : > { %v452_v35 = vmax.f32 %v450_v33, 0.0  ;;  %v451_v36 = vmax.f32 %v449_v34, 0.0 }
  0xb6   : > { %v456_v37 = vadd.f32 1e-05, %v452_v35  ;;  %v455_v38 = vadd.f32 1e-05, %v451_v36 }
  0xb8   : > { %1036 = vrsqrt.f32 %v456_v37  ;;  %vm463_vm4 = vweird.f32 %v455_v38  ;;  %vm473_vm6 = vweird.f32 %v456_v37 }
  0xb9   : > { %1038 = vrsqrt.f32 %v455_v38 }
  0xbe   : > { %v1037_v41 = vpop.eup %1036 }
  0xbf   : > { %v1039_v42 = vpop.eup %1038  ;;  %v468_v43 = vmul.f32 %v1037_v41, %v456_v37  ;;  %vm474_vm3 = vweird.f32 %v1037_v41 }
  0xc0   : > { %v458_v44 = vmul.f32 %v1039_v42, %v455_v38  ;;  %vm464_vm2 = vweird.f32 %v1039_v42  ;;  %vm475_vm7 = vmor %vm473_vm6, %vm474_vm3 }
  0xc1   : > { %v469_v46 = vmul.f32 %v1037_v41, %v468_v43  ;;  %vm465_vm5 = vmor %vm463_vm4, %vm464_vm2 }
  0xc2   : > { %v459_v47 = vmul.f32 %v1039_v42, %v458_v44 }
  0xc3   : > { %v470_v48 = vmul.f32 0.5, %v469_v46 }
  0xc4   : > { %v460_v49 = vmul.f32 0.5, %v459_v47 }
  0xc5   : > { %v471_v50 = vsub.f32 1.5, %v470_v48 }
  0xc6   : > { %v461_v51 = vsub.f32 1.5, %v460_v49 }
  0xc7   : > { %v472_v52 = vmul.f32 %v1037_v41, %v471_v50 }
  0xc8   : > { %v462_v53 = vmul.f32 %v1039_v42, %v461_v51 }
  0xc9   : > { %v476_v59 = vsel %vm475_vm7, %v1037_v41, %v472_v52 }
  0xca   : > { %v466_v56 = vsel %vm465_vm5, %v1039_v42, %v462_v53  ;;  %v478_v63 = vmul.f32 %v476_v59, %v454_v60 }
  0xcb   : > { %v477_v57 = vmul.f32 %v466_v56, %v453_v54 }
  0xcc   : > { %v484_v1 = vmul.f32 %v1031_v55, %v478_v63 }
  0xcd   : > { %v483_v61 = vmul.f32 %v1031_v55, %v477_v57 }
  0xce   : > { %v490_v2 = vadd.f32 %v1032_v58, %v484_v1 }
  0xcf   : > { %v489_v62 = vadd.f32 %v1032_v58, %v483_v61 }
  0xd1   : > { %895 = vmatmul.msk.f32.vlgmr.msra.gmra.mxu0 %vm421_vm0, %v489_v62 }
  0xd9   : > { %896 = vmatmul.msk.f32.gmra.mxu0 %vm421_vm0, %v490_v2 }
 0x14e   : > { %v526_v20 = vpop.f32.mrf.mxu0 }
 0x14f   : > { %v527_v22 = vadd.f32 %v1033_v19, %v526_v20 }
 0x151   : > { %v544_v23 = vmul.f32 %v537_v21, %v527_v22 }
 0x153   : > { %548 = vrot.lane.b32.xlu0 %v544_v23, %s1244_s20  ;;  %897 = vmatmul.msk.f32.vlgmr.msra.gmra.mxu1 %vm554_vm8, %v544_v23 }
 0x154   : > { %901 = vmatmul.msk.f32.vlgmr.msra.gmra.mxu3 %vm554_vm8, %v544_v23 }
 0x156   : > { %v529_v24 = vpop.f32.mrf.mxu0 }
 0x157   : > { %v530_v25 = vadd.f32 %v1033_v19, %v529_v24 }
 0x159   : > { %v545_v26 = vmul.f32 %v542_v18, %v530_v25 }
 0x15b   : > { %550 = vrot.lane.b32.xlu1 %v545_v26, %s1244_s20  ;;  %898 = vmatmul.msk.f32.vlgmr.msra.gmra.mxu2 %vm554_vm8, %v545_v26  ;;  %s1116_s20 = scalar_lea.hbm %s1115_s16, 16 }
 0x15c   : > { %902 = vmatmul.msk.f32.gmra.mxu3 %vm554_vm8, %v545_v26  ;;  %903 = vmatmul.msk.f32.vlgmr.msrb.gmra.mxu1 %vm554_vm8, %v544_v23  ;;  %p1117_p4 = scmp.ne.s32.totalorder %s1115_s16, %s1116_s20  ;;  %p1122_p9 = scmp.lt.s32.totalorder %s1120_s14, %s1116_s20 }
 0x15e   : > { %p1118_p5 = pnand %p1117_p4, %p1346_p3  ;;  %p1123_p10 = por %p1122_p9, %p1121_p7 }
 0x160   : > { %p1119_p6 = pneg %p1118_p5 }
 0x162   : > { %p1124_p11 = pnand %p1123_p10, %p1119_p6 }
 0x163   : > { %899 = vmatmul.msk.f32.vlgmr.msrb.gmra.mxu2 %vm554_vm8, %v544_v23 }
 0x164   : > { %904 = vmatmul.msk.f32.gmra.mxu1 %vm554_vm8, %v545_v26 }
 0x16b   : > { %900 = vmatmul.msk.f32.gmra.mxu2 %vm554_vm8, %v545_v26 }
 0x1c5   : > { %v549_v27 = vpop.permute.xlu0 %548 }
 0x1c6   : > { %555 = vst.msk [vmem:[%s389_s25] sm:$0xff] %vm554_vm8, %v549_v27 }
 0x1cd   : > { %v551_v28 = vpop.permute.xlu1 %550 }
 0x1ce   : > { %556 = vst.msk [vmem:[%s389_s25 + $0x8] sm:$0xff] %vm554_vm8, %v551_v28 }
 0x1cf   : > { %1127 = shalt.err (!%p1124_p11)
}
 0x1d0   : > { %s1245_s22 = smov 128   ;;  %s1246_s13 = smov 8   ;;  %v594_v29 = vpop.f32.mrf.mxu1 }
 0x1d1   : > { %929 = dma.vmem_to_hbm [thread:$0]  (%p1346_p3), %s698_s27, 256, %s700_s17, %s678_s11, %s1245_s22, %s1245_s22, %s1246_s13  }
 0x1d2   : > { %s396_s25 = scalar_lea.vmem [#allocation8], %s888_s10  ;;  %s916_s23 = sshll.u32 %s1218_s30, 3 }
 0x1d3   : > { %669 = vst [vmem:[%s396_s25] sm:$0xff] %v594_v29  ;;  %s912_s16 = sshll.u32 %s1222_s9, 4  ;;  %s717_s11 = sshll.u32 %s396_s25, 4  ;;  %s718_s11 = int_to_ptr.vmem [resolvable:$true] %s717_s11 }
 0x1d4   : > { %s714_s20 = sadd.s32 %s916_s23, %s912_s16  ;;  %s683_s30 = scalar_lea.sflag [#allocation9], %s1450_s24 }
 0x1d5   : > { %s913_s26 = sshll.u32 %s714_s20, 3  ;;  %s1148_s13 = scalar_lea.hbm %s1523_s8, 256 }
 0x1d6   : > { %s716_s10 = scalar_lea.hbm %s1523_s8, %s913_s26 }
 0x1d7   : > { %v640_v30 = vpop.f32.mrf.mxu3  ;;  %s719_s14 = sshll.u32 %s716_s10, 4  ;;  %s720_s14 = int_to_ptr.hbm [resolvable:$true] %s719_s14 }
 0x1d8   : > { %671 = vst [vmem:[%s396_s25 + $0x10] sm:$0xff] %v640_v30  ;;  %s1142_s9 = sshra.s32 %s720_s14, 4  ;;  %s1143_s9 = int_to_ptr.hbm [resolvable:$true] %s1142_s9 }
 0x1d9   : > { %v663_v31 = vpop.f32.mrf.mxu1  ;;  %s1144_s18 = scalar_lea.hbm %s1143_s9, 64  ;;  %p1149_p1 = scmp.lt.s32.totalorder %s1143_s9, %s1523_s8 }
 0x1da   : > { %672 = vst [vmem:[%s396_s25 + $0x18] sm:$0xff] %v663_v31  ;;  %p1145_p12 = scmp.ne.s32.totalorder %s1143_s9, %s1144_s18  ;;  %p1150_p2 = scmp.lt.s32.totalorder %s1148_s13, %s1144_s18 }
 0x1dc   : > { %p1146_p13 = pnand %p1145_p12, %p1346_p3  ;;  %p1151_p4 = por %p1150_p2, %p1149_p1 }
 0x1de   : > { %v597_v32 = vpop.f32.mrf.mxu2  ;;  %p1147_p0 = pneg %p1146_p13 }
 0x1df   : > { %673 = vst [vmem:[%s396_s25 + $0x20] sm:$0xff] %v597_v32  ;;  %v643_v33 = vpop.f32.mrf.mxu3 }
 0x1e0   : > { %675 = vst [vmem:[%s396_s25 + $0x30] sm:$0xff] %v643_v33  ;;  %p1152_p5 = pnand %p1151_p4, %p1147_p0 }
 0x1e1   : > { %v666_v34 = vpop.f32.mrf.mxu1 }
 0x1e2   : > { %676 = vst [vmem:[%s396_s25 + $0x38] sm:$0xff] %v666_v34 }
 0x1e6   : > { %v617_v35 = vpop.f32.mrf.mxu2 }
 0x1e7   : > { %670 = vst [vmem:[%s396_s25 + $0x8] sm:$0xff] %v617_v35 }
 0x1ee   : > { %v620_v36 = vpop.f32.mrf.mxu2 }
 0x1ef   : > { %674 = vst [vmem:[%s396_s25 + $0x28] sm:$0xff] %v620_v36 }
 0x1f0   : > { %1155 = shalt.err (!%p1152_p5)
}
 0x1f1   : > { %s1247_s24 = smov 512   ;;  %s1248_s25 = smov 32  }
 0x1f2   : > { %930 = dma.vmem_to_hbm [thread:$0]  (%p1346_p3), %s718_s11, 1024, %s720_s14, %s683_s30, %s1247_s24, %s1247_s24, %s1248_s25  }
 0x1f3 PF: > { %s1540_s20 = sld [smem:[#allocation14_spill]]  ;;  %p951_p6 = scmp.ge.s32.totalorder %s1234_s12, 2 }
 0x1f5   : > { %p941_p7 = pnand %p951_p6, %p1355_p8 }
 0x1f7   : > { %p942_p9 = pneg %p941_p7 }
 0x1f9   : > { %s734_s17 = sand.u32 1, %s1540_s20  }
 0x1fa   : > { %s735_s27 = scalar_lea.sflag [#allocation4], %s734_s17 }
 0x1fb   : > { %1197 = dma.done.wait (%p942_p9), %s735_s27, 256  }
 0x1fc   : > { %1199 = vsyncadd (%p942_p9), %s735_s27, 4294967040  ;;  %s745_s10 = scalar_lea.sflag [#allocation9], %s734_s17 }
 0x1fd   : > { %1201 = dma.done.wait (%p942_p9), %s745_s10, 1024  }
 0x1fe   : > { %1203 = vsyncadd (%p942_p9), %s745_s10, 4294966272  ;;  %s27_s12 = sadd.s32 1, %s1234_s12   ;;  %s1542_s30 = sld [smem:[#allocation15_spill]] }
 0x1ff   : > { %p24_p10 = scmp.ge.s32.totalorder %s27_s12, 6   ;;  %s1543_s9 = sld [smem:[#allocation16_spill]] }
 0x200   : > { %s1544_s10 = sld [smem:[#allocation17_spill]]  ;;  %s1546_s27 = smov %s1210_s28 }
 0x201   : > { %s1545_s11 = sld [smem:[#allocation18_spill]]  ;;  %s1547_s28 = smov %s1214_s29 }
 0x202   : > { %s1548_s29 = smov %s1376_s15  ;;  %26 = sbr.rel (!%p24_p10) target bundleno = 9 (0x9), region = 112 }
 0x207   :  { %751 = vsyncpa [#allocation3], 1 }
 0x208   :  { %753 = vsyncpa [#allocation3 + $0x1], 1 }
 0x209   :  { %754 = vsyncpa [#allocation6], 1 }
 0x20a   :  { %755 = vsyncpa [#allocation4], 1 }
 0x20b   :  { %757 = vsyncpa [#allocation4 + $0x1], 1 }
 0x20c   :  { %758 = vsyncpa [#allocation9], 1 }
 0x20d   :  { %760 = vsyncpa [#allocation9 + $0x1], 1 }

</bundles_post_ra>
